<compile_context>
chip_gen: v6e
topology: v6e:2x2x1
jax: 0.10.0
libtpu: 0.0.40
codegen_flags: <defaults>
</compile_context>

<pallas_src>
import jax
import jax.numpy as jnp
from jax import lax
from jax.experimental import pallas as pl
from jax.experimental.pallas import tpu as pltpu


# --------------------------------------------------------------------------
# Kernel: everything VMEM-resident, one invocation, no grid.
# --------------------------------------------------------------------------
def kmeans_kernel(ht_ref, ft_ref, o_ref):
    # ht_ref : (D, N)  == h_real^T   (lane-dense along N)
    # ft_ref : (K, N)  == F^T        (lane-dense along N)
    # o_ref  : (1, 1)  scalar loss in SMEM
    ht = ht_ref[...].astype(jnp.float32)
    ft = ft_ref[...].astype(jnp.float32)

    # trace(h h^T) = sum(h * h)          -- VPU elementwise + reduce
    t1 = jnp.sum(ht * ht)

    # trace(F^T h h^T F) = ||F^T h||_F^2 -- one small MXU matmul, contraction
    # along the shared N (lane) axis, no transpose, full precision (free here).
    m = lax.dot_general(
        ft, ht,
        dimension_numbers=(((1,), (1,)), ((), ())),
        preferred_element_type=jnp.float32,
        precision=lax.Precision.HIGHEST,
    )  # (K, D)
    t2 = jnp.sum(m * m)

    o_ref[0, 0] = t1 - t2


# --------------------------------------------------------------------------
# Module-style wrapper: F is the fixed (N, K) orthogonal parameter, laid out
# as F^T exactly once here (module init).  The returned callable matches the
# PyTorch forward(h_real) -> scalar loss.
# --------------------------------------------------------------------------
def make_kmeans_loss(F):
    f_t = jnp.asarray(F).T  # (K, N), one-time fixed-parameter layout

    def _pallas(h_t):
        return pl.pallas_call(
            kmeans_kernel,
            out_shape=jax.ShapeDtypeStruct((1, 1), jnp.float32),
            in_specs=[
                pl.BlockSpec(memory_space=pltpu.MemorySpace.VMEM),  # h^T (D, N)
                pl.BlockSpec(memory_space=pltpu.MemorySpace.VMEM),  # F^T (K, N)
            ],
            out_specs=pl.BlockSpec(memory_space=pltpu.MemorySpace.SMEM),
        )(h_t, f_t)

    @jax.jit
    def loss_fn(h_real):
        # (N, D) -> (D, N): tiny XLA transpose so N is the lane dimension in
        # VMEM (saves ~6x padded DMA + vreg count inside the kernel).
        return _pallas(h_real.T)[0, 0]

    return loss_fn


# --------------------------------------------------------------------------
if __name__ == "__main__":
    # Shapes consistent with the module:
    #   F = orthogonal_(randn(batch_size * 150, n_clusters))
    #   h_real has batch_size * 150 rows (feature dim 10 in the application).
    batch_size = 2
    n_clusters = 3
    D = 10
    N = batch_size * 150          # 300

    key = jax.random.PRNGKey(0)
    k_h, k_f = jax.random.split(key)

    h_real = jax.random.normal(k_h, (N, D), jnp.float32)
    # Orthogonal init (orthonormal columns), like torch.nn.init.orthogonal_.
    F, _ = jnp.linalg.qr(jax.random.normal(k_f, (N, n_clusters), jnp.float32))

    kmeans_loss = make_kmeans_loss(F)   # module init: F^T laid out once
    loss = kmeans_loss(h_real)
    jax.block_until_ready(loss)

    # Reference computed exactly the way the PyTorch module does it
    # (materializing WTW), in high precision.
    hi = jax.lax.Precision.HIGHEST
    WTW = jnp.matmul(h_real, h_real.T, precision=hi)
    FTWTWF = jnp.matmul(jnp.matmul(F.T, WTW, precision=hi), F, precision=hi)
    ref = jnp.trace(WTW) - jnp.trace(FTWTWF)
    jax.block_until_ready(ref)

    assert loss.shape == ()
    assert abs(float(loss) - float(ref)) <= 1e-2 * abs(float(ref)) + 1.0, (
        float(loss), float(ref))
    print("KERNEL_OK")
</pallas_src>

<mosaic_0001>
module attributes {stable_mosaic.version = 11 : i64} {
  func.func @kmeans_kernel(%arg0: memref<10x300xf32, #tpu.memory_space<vmem>>, %arg1: memref<3x300xf32, #tpu.memory_space<vmem>>, %arg2: memref<1x1xf32, #tpu.memory_space<smem>>) attributes {dimension_semantics = [], scalar_prefetch = 0 : i64, scratch_operands = 0 : i64, tpu.core_type = #tpu.core_type<tc>} {
    %c0 = arith.constant 0 : index
    %c0_0 = arith.constant 0 : index
    %0 = vector.load %arg0[%c0, %c0_0] : memref<10x300xf32, #tpu.memory_space<vmem>>, vector<10x300xf32>
    %c0_1 = arith.constant 0 : index
    %c0_2 = arith.constant 0 : index
    %1 = vector.load %arg1[%c0_1, %c0_2] : memref<3x300xf32, #tpu.memory_space<vmem>>, vector<3x300xf32>
    %2 = arith.mulf %0, %0 : vector<10x300xf32>
    %3 = vector.shape_cast %2 : vector<10x300xf32> to vector<1x10x300xf32>
    %cst = arith.constant dense<0.000000e+00> : vector<1xf32>
    %4 = vector.multi_reduction <add>, %3, %cst [1, 2] : vector<1x10x300xf32> to vector<1xf32>
    %5 = vector.shape_cast %4 : vector<1xf32> to vector<1x1x1xf32>
    %6 = vector.extract %5[0, 0, 0] : f32 from vector<1x1x1xf32>
    %cst_3 = arith.constant dense<0.000000e+00> : vector<3x10xf32>
    %7 = tpu.matmul %1, %0, %cst_3 {dimension_numbers = #tpu.dot_dimension_numbers<[1], [1], [0], [0], [0, 0, 1, 0], [], []>, precision = #tpu.contract_precision<fp32>} : vector<3x300xf32>, vector<10x300xf32>, vector<3x10xf32> -> vector<3x10xf32>
    %8 = arith.mulf %7, %7 : vector<3x10xf32>
    %9 = vector.shape_cast %8 : vector<3x10xf32> to vector<1x3x10xf32>
    %cst_4 = arith.constant dense<0.000000e+00> : vector<1xf32>
    %10 = vector.multi_reduction <add>, %9, %cst_4 [1, 2] : vector<1x3x10xf32> to vector<1xf32>
    %11 = vector.shape_cast %10 : vector<1xf32> to vector<1x1x1xf32>
    %12 = vector.extract %11[0, 0, 0] : f32 from vector<1x1x1xf32>
    %13 = arith.subf %6, %12 : f32
    %c0_5 = arith.constant 0 : index
    %c0_6 = arith.constant 0 : index
    %14 = memref.load %arg2[%c0_5, %c0_6] : memref<1x1xf32, #tpu.memory_space<smem>>
    memref.store %13, %arg2[%c0_5, %c0_6] : memref<1x1xf32, #tpu.memory_space<smem>>
    return
  }
}

</mosaic_0001>

<bundles_post_ra>
// kernel: loss_fn.1
= control target key start
LH: loop header
LB: loop body
LE: loop exit
PB: predicated region body
PF: predicated region fallthrough
CT: control target
= control target key end

     0   :  { %7 = vsyncpa [#allocation3], 0  ;;  %s1327_s0 = inlined_call_operand.hbm [shape: f32[10,300], index: 0, kind: input, shape index: {}]   ;;  %s1328_s1 = inlined_call_operand.hbm [shape: f32[3,300], index: 1, kind: input, shape index: {}]   ;;  %s1329_s2 = inlined_call_operand.hbm [shape: f32[1,1], index: 2, kind: output, shape index: {}]  }
   0x1   :  { %8 = vsyncpa [#allocation6], 0 }
   0x2   :  { %9 = vsyncpa [#allocation4], 0  ;;  %s1198_s9 = smov [#allocation2]  }
   0x3   :  { %s15_s10 = sshll.u32 %s1198_s9, 4  ;;  %s16_s10 = int_to_ptr.vmem [resolvable:$true] %s15_s10 }
   0x4   :  { %s1152_s11 = scalar_lea.vmem %s16_s10, 768  ;;  %p1157_p1 = scmp.lt.s32.totalorder %s16_s10, %s16_s10 }
   0x5   :  { %p1153_p0 = scmp.ne.s32.totalorder %s16_s10, %s1152_s11  ;;  %p1158_p2 = scmp.lt.s32.totalorder %s1152_s11, %s1152_s11 }
   0x7   :  { %p1159_p3 = por %p1158_p2, %p1157_p1 }
   0x9   :  { %p1160_p4 = pnand %p1159_p3, %p1153_p0 }
   0xb   :  { %1163 = shalt.err (!%p1160_p4)
}
   0xc   :  { %s1199_s12 = smov 384   ;;  %s1200_s13 = smov 24  }
   0xd   :  { %21 = dma.hbm_to_vmem [thread:$0]  %s1327_s0, 768, %s16_s10, [#allocation3], %s1199_s12, %s1199_s12, %s1200_s13  }
   0xe   :  { %s1201_s16 = smov [#allocation5]  }
   0xf   :  { %s28_s17 = sshll.u32 %s1201_s16, 4  ;;  %s29_s17 = int_to_ptr.vmem [resolvable:$true] %s28_s17 }
  0x10   :  { %s1172_s18 = scalar_lea.vmem %s29_s17, 192  ;;  %p1177_p6 = scmp.lt.s32.totalorder %s29_s17, %s29_s17 }
  0x11   :  { %p1173_p5 = scmp.ne.s32.totalorder %s29_s17, %s1172_s18  ;;  %p1178_p7 = scmp.lt.s32.totalorder %s1172_s18, %s1172_s18 }
  0x13   :  { %p1179_p8 = por %p1178_p7, %p1177_p6 }
  0x15   :  { %p1180_p9 = pnand %p1179_p8, %p1173_p5 }
  0x17   :  { %1183 = shalt.err (!%p1180_p9)
}
  0x18   :  { %31 = dma.hbm_to_vmem [thread:$0]  %s1328_s1, 192, %s29_s17, [#allocation6]  }
  0x19   :  { %1192 = dma.done.wait [#allocation3], 768  }
  0x1a   :  { %1193 = vsyncadd [#allocation3], 4294966528 }
  0x1b   :  { %1194 = dma.done.wait [#allocation6], 192  }
  0x1c   :  { %1195 = vsyncadd [#allocation6], 4294967104  ;;  %v1226_v0 = vld [vmem:[#allocation2 + $0x20] sm:$0x3]  ;;  %v1228_v1 = vld [vmem:[#allocation2 + $0x18] sm:$0x3] }
  0x1d   :  { %v1230_v2 = vld [vmem:[#allocation2 + $0x8] sm:$0xff]  ;;  %v1233_v3 = vand.u32 4294901760, %v1226_v0  ;;  %v1236_v4 = vand.u32 4294901760, %v1228_v1  ;;  %v1241_v6 = vld [vmem:[#allocation2] sm:$0xff]  ;;  %v44_v7 = vld [vmem:[#allocation5] sm:$0x77]  ;;  %v49_v62 = vmul.f32 %v1228_v1, %v1228_v1 }
  0x1e   :  { %v1239_v5 = vand.u32 4294901760, %v1230_v2  ;;  %v1244_v8 = vand.u32 4294901760, %v1241_v6  ;;  %v75_v9 = vcombine.high %v44_v7, %v44_v7  ;;  %v1246_v10 = vand.u32 4294901760, %v44_v7  ;;  %v1265_v33 = vld [vmem:[#allocation2 + $0x28] sm:$0x3]  ;;  %v1269_v39 = vld [vmem:[#allocation2 + $0x10] sm:$0xff] }
  0x1f   :  { %114 = vmatprep.subr.mxu0 %v1233_v3  ;;  %v198_v11 = vsub.f32 %v1226_v0, %v1233_v3  ;;  %v204_v12 = vsub.f32 %v1228_v1, %v1236_v4  ;;  %vm53_vm0 = vcmask 359424   ;;  %v45_v38 = vld [vmem:[#allocation5 + $0x8] sm:$0x7]  ;;  %v1202_v52 = vmov 0.0   ;;  %s1204_s22 = smov [#allocation7]  }
  0x20   :  { %v210_v13 = vsub.f32 %v1230_v2, %v1239_v5  ;;  %116 = vmatpush1.xpose.msra.mxu0 %v1236_v4  ;;  %v1256_v14 = vand.u32 4294901760, %v75_v9  ;;  %v160_v15 = vsub.f32 %v44_v7, %v1246_v10  ;;  %v216_v16 = vsub.f32 %v1241_v6, %v1244_v8 }
  0x21   :  { %118 = vmatprep.subr.mxu0 %v1239_v5  ;;  %v199_v17 = vand.u32 4294901760, %v198_v11  ;;  %v205_v18 = vand.u32 4294901760, %v204_v12  ;;  %v83_v37 = vsel %vm53_vm0, %v1265_v33, 0  ;;  %v77_v41 = vsel %vm53_vm0, %v45_v38, 0 }
  0x22   :  { %v211_v19 = vand.u32 4294901760, %v210_v13  ;;  %v154_v20 = vsub.f32 %v75_v9, %v1256_v14  ;;  %v161_v21 = vand.u32 4294901760, %v160_v15  ;;  %v217_v22 = vand.u32 4294901760, %v216_v16  ;;  %254 = vmatprep.mubr.f32.mxu1 %v1256_v14 }
  0x23   :  { %v200_v23 = vsub.f32 %v198_v11, %v199_v17  ;;  %v206_v24 = vsub.f32 %v204_v12, %v205_v18  ;;  %v1271_v40 = vand.u32 4294901760, %v83_v37  ;;  %v80_v42 = vsel %vm53_vm0, %v1269_v39, 0 }
  0x24   :  { %v212_v25 = vsub.f32 %v210_v13, %v211_v19  ;;  %120 = vmatpush1.xpose.msra.mxu0 %v1244_v8  ;;  %v155_v26 = vand.u32 4294901760, %v154_v20  ;;  %v162_v27 = vsub.f32 %v160_v15, %v161_v21  ;;  %v218_v28 = vsub.f32 %v216_v16, %v217_v22 }
  0x25   :  { %v201_v29 = vand.u32 4294901760, %v200_v23  ;;  %v207_v30 = vand.u32 4294901760, %v206_v24  ;;  %291 = vmatprep.subr.mxu0 %v198_v11  ;;  %v1278_v43 = vand.u32 4294901760, %v77_v41  ;;  %v690_v44 = vsub.f32 %v83_v37, %v1271_v40 }
  0x26   :  { %v213_v31 = vand.u32 4294901760, %v212_v25  ;;  %v156_v32 = vsub.f32 %v154_v20, %v155_v26  ;;  %v163_v34 = vand.u32 4294901760, %v162_v27  ;;  %v219_v36 = vand.u32 4294901760, %v218_v28 }
  0x27   :  { %202 = vmatprep.subr.mxu1 %v201_v29  ;;  %v1282_v45 = vand.u32 4294901760, %v80_v42  ;;  %v651_v46 = vsub.f32 %v77_v41, %v1278_v43  ;;  %v691_v48 = vand.u32 4294901760, %v690_v44  ;;  %vm1203_vm1 = vmmov 0  }
  0x28   :  { %208 = vmatpush1.xpose.msra.mxu1 %v207_v30  ;;  %v157_v35 = vand.u32 4294901760, %v156_v32  ;;  %v46_v58 = vmul.f32 %v1241_v6, %v1241_v6  ;;  %v47_v59 = vmul.f32 %v1230_v2, %v1230_v2  ;;  %v48_v60 = vmul.f32 %v1269_v39, %v1269_v39 }
  0x29   :  { %214 = vmatprep.subr.mxu1 %v213_v31  ;;  %v697_v47 = vsub.f32 %v80_v42, %v1282_v45  ;;  %v652_v49 = vand.u32 4294901760, %v651_v46  ;;  %v692_v50 = vsub.f32 %v690_v44, %v691_v48  ;;  %vm56_vm2 = vcmask 1041408  }
  0x2a   :  { %158 = vmatprep.mubr.f32.mxu0 %v157_v35  ;;  %v52_v61 = vadd.f32 %v47_v59, %v46_v58  ;;  %v54_v63 = vsel %vm53_vm0, %v48_v60, 0.0  ;;  %v51_v6 = vmul.f32 %v1265_v33, %v1265_v33  ;;  %vm61_vm3 = vcmask 353280  }
  0x2b   :  { %164 = vmatmul.mubr.f32.vlgmr.msra.gmra.mxu0 %v163_v34  ;;  %v698_v51 = vand.u32 4294901760, %v697_v47  ;;  %v653_v53 = vsub.f32 %v651_v46, %v652_v49  ;;  %v693_v54 = vand.u32 4294901760, %v692_v50  ;;  %vm1043_vm4 = vcmask 75776  }
  0x2c   :  { %294 = vmatpush1.xpose.msra.mxu0 %v204_v12  ;;  %220 = vmatpush1.xpose.msra.mxu1 %v219_v36  ;;  %v62_v9 = vsel %vm61_vm3, %v51_v6, 0.0 }
  0x2d   :  { %297 = vmatprep.subr.mxu0 %v210_v13  ;;  %372 = vmatprep.subr.mxu1 %v1233_v3  ;;  %v699_v55 = vsub.f32 %v697_v47, %v698_v51  ;;  %v654_v56 = vand.u32 4294901760, %v653_v53 }
  0x2e   :  { %335 = vmatprep.mubr.f32.mxu0 %v154_v20 }
  0x2f   :  { %256 = vmatmul.mubr.f32.vlgmr.msra.gmra.mxu1 %v1246_v10  ;;  %v700_v57 = vand.u32 4294901760, %v699_v55 }
  0x30   :  { %300 = vmatpush1.xpose.msra.mxu0 %v216_v16  ;;  %374 = vmatpush1.xpose.msra.mxu1 %v1236_v4 }
  0x31   :  { %454 = vmatprep.subr.mxu0 %v199_v17  ;;  %376 = vmatprep.subr.mxu1 %v1239_v5 }
  0x32   :  { %414 = vmatprep.mubr.f32.mxu1 %v155_v26 }
  0x33   :  { %338 = vmatmul.mubr.f32.vlgmr.msra.gmra.mxu0 %v160_v15 }
  0x34   :  { %458 = vmatpush1.xpose.msra.mxu0 %v205_v18  ;;  %378 = vmatpush1.xpose.msra.mxu1 %v1244_v8 }
  0x35   :  { %462 = vmatprep.subr.mxu0 %v211_v19  ;;  %536 = vmatprep.subr.mxu1 %v1233_v3  ;;  %v55_v3 = vadd.f32 %v54_v63, %v52_v61 }
  0x36   :  { %500 = vmatprep.mubr.f32.mxu0 %v1256_v14 }
  0x37   :  { %418 = vmatmul.mubr.f32.vlgmr.msra.gmra.mxu1 %v161_v21 }
  0x38   :  { %466 = vmatpush1.xpose.msra.mxu0 %v217_v22  ;;  %538 = vmatpush1.xpose.msra.mxu1 %v1236_v4  ;;  %v50_v4 = vmul.f32 %v1226_v0, %v1226_v0 }
  0x39   :  { %1090 = vmatprep.subr.mxu0 %v1202_v52  ;;  %540 = vmatprep.subr.mxu1 %v1239_v5  ;;  %v57_v5 = vsel %vm56_vm2, %v49_v62, 0.0 }
  0x3a   :  { %576 = vmatprep.mubr.f32.mxu1 %v1256_v14  ;;  %v58_v7 = vadd.f32 %v57_v5, %v55_v3  ;;  %v59_v2 = vsel %vm56_vm2, %v50_v4, 0.0 }
  0x3b   :  { %502 = vmatmul.mubr.f32.vlgmr.msra.gmra.mxu0 %v1246_v10 }
  0x3c   :  { %1091 = vmatpush3.xpose.msra.mxu0 %v1271_v40  ;;  %542 = vmatpush1.xpose.msra.mxu1 %v1244_v8  ;;  %v60_v8 = vadd.f32 %v59_v2, %v58_v7 }
  0x3d   :  { %1092 = vmatprep.subr.mxu0 %v1202_v52  ;;  %1097 = vmatprep.subr.mxu1 %v1202_v52 }
  0x3e   :  { %1094 = vmatprep.mubr.msk.f32.mxu0 %vm1203_vm1, %v1202_v52 }
  0x3f   :  { %578 = vmatmul.mubr.f32.vlgmr.msra.gmra.mxu1 %v1246_v10  ;;  %v63_v10 = vadd.f32 %v62_v9, %v60_v8 }
  0x40   :  { %1093 = vmatpush3.xpose.msra.mxu0 %v1282_v45  ;;  %1098 = vmatpush3.xpose.msra.mxu1 %v693_v54 }
  0x41   :  { %1104 = vmatprep.subr.mxu0 %v1202_v52  ;;  %1099 = vmatprep.subr.mxu1 %v1202_v52 }
  0x42   :  { %1101 = vmatprep.mubr.msk.f32.mxu1 %vm1203_vm1, %v1202_v52  ;;  %64 = vadd.xlane.f32.xlu0 %v63_v10 }
  0x43   :  { %1095 = vmatmul.mubr.f32.vlgmr.msra.gmra.mxu0 %v654_v56 }
  0x44   :  { %1105 = vmatpush3.xpose.msra.mxu0 %v690_v44  ;;  %1100 = vmatpush3.xpose.msra.mxu1 %v700_v57 }
  0x45   :  { %1106 = vmatprep.subr.mxu0 %v1202_v52  ;;  %1111 = vmatprep.subr.mxu1 %v1202_v52 }
  0x46   :  { %1108 = vmatprep.mubr.msk.f32.mxu0 %vm1203_vm1, %v1202_v52 }
  0x47   :  { %1102 = vmatmul.mubr.f32.vlgmr.msra.gmra.mxu1 %v1278_v43 }
  0x48   :  { %1107 = vmatpush3.xpose.msra.mxu0 %v697_v47  ;;  %1112 = vmatpush3.xpose.msra.mxu1 %v1271_v40 }
  0x49   :  { %1118 = vmatprep.subr.mxu0 %v1202_v52  ;;  %1113 = vmatprep.subr.mxu1 %v1202_v52 }
  0x4a   :  { %1115 = vmatprep.mubr.msk.f32.mxu1 %vm1203_vm1, %v1202_v52 }
  0x4b   :  { %1109 = vmatmul.mubr.f32.vlgmr.msra.gmra.mxu0 %v651_v46 }
  0x4c   :  { %1119 = vmatpush3.xpose.msra.mxu0 %v691_v48  ;;  %1114 = vmatpush3.xpose.msra.mxu1 %v1282_v45 }
  0x4d   :  { %1120 = vmatprep.subr.mxu0 %v1202_v52  ;;  %1125 = vmatprep.subr.mxu1 %v1202_v52 }
  0x4e   :  { %1122 = vmatprep.mubr.msk.f32.mxu0 %vm1203_vm1, %v1202_v52 }
  0x4f   :  { %1116 = vmatmul.mubr.f32.vlgmr.msra.gmra.mxu1 %v652_v49 }
  0x50   :  { %1121 = vmatpush3.xpose.msra.mxu0 %v698_v51  ;;  %1126 = vmatpush3.xpose.msra.mxu1 %v1271_v40 }
  0x51   :  { %1127 = vmatprep.subr.mxu1 %v1202_v52  ;;  %1129 = vmatprep.mubr.msk.f32.mxu1 %vm1203_vm1, %v1202_v52 }
  0x53   :  { %1123 = vmatmul.mubr.f32.vlgmr.msra.gmra.mxu0 %v1278_v43 }
  0x54   :  { %1128 = vmatpush3.xpose.msra.mxu1 %v1282_v45 }
  0x57   :  { %1130 = vmatmul.mubr.f32.vlgmr.msra.gmra.mxu1 %v1278_v43 }
  0xcb   :  { %v65_v46 = vpop.xlane.xlu0 %64 }
  0xcc   :  { %v66_v47 = vrot.slane %v65_v46, 4 }
  0xce   :  { %v67_v48 = vadd.f32 %v66_v47, %v65_v46 }
  0xd0   :  { %v68_v49 = vrot.slane %v67_v48, 2 }
  0xd2   :  { %v69_v50 = vadd.f32 %v68_v49, %v67_v48 }
  0xd4   :  { %v70_v51 = vrot.slane %v69_v50, 1 }
  0xd6   :  { %v71_v52 = vadd.f32 %v70_v51, %v69_v50 }
  0xd8   :  { %1132 = vpush %v71_v52 }
  0xeb   :  { %v165_v11 = vpop.f32.mrf.mxu0 }
  0xed   :  { %v167_v1 = vpop.f32.mrf.mxu0 }
  0xef   :  { %v257_v12 = vpop.f32.mrf.mxu1 }
  0xf0   :  { %v258_v0 = vadd.f32 %v257_v12, %v165_v11 }
  0xf1   :  { %v259_v13 = vpop.f32.mrf.mxu1 }
  0xf3   :  { %v339_v14 = vpop.f32.mrf.mxu0 }
  0xf4   :  { %v340_v20 = vadd.f32 %v339_v14, %v258_v0 }
  0xf5   :  { %v341_v15 = vpop.f32.mrf.mxu0 }
  0xf7   :  { %v419_v16 = vpop.f32.mrf.mxu1 }
  0xf8   :  { %v420_v22 = vadd.f32 %v419_v16, %v340_v20 }
  0xf9   :  { %v421_v17 = vpop.f32.mrf.mxu1 }
  0xfb   :  { %v503_v18 = vpop.f32.mrf.mxu0 }
  0xfc   :  { %v504_v25 = vadd.f32 %v503_v18, %v420_v22 }
  0xfd   :  { %v505_v19 = vpop.f32.mrf.mxu0 }
  0xff   :  { %v579_v21 = vpop.f32.mrf.mxu1 }
 0x100   :  { %v580_v27 = vadd.f32 %v579_v21, %v504_v25 }
 0x101   :  { %v581_v23 = vpop.f32.mrf.mxu1 }
 0x103   :  { %v656_v24 = vpop.f32.mrf.mxu0 }
 0x104   :  { %v657_v30 = vadd.f32 %v656_v24, %v580_v27 }
 0x105   :  { %v1096_v26 = vpop.f32.mrf.mxu0 }
 0x107   :  { %v737_v28 = vpop.f32.mrf.mxu1 }
 0x108   :  { %v738_v32 = vadd.f32 %v737_v28, %v657_v30 }
 0x109   :  { %v1103_v29 = vpop.f32.mrf.mxu1  ;;  %s1133_s0 = spop %1132 }
 0x10b   :  { %v813_v31 = vpop.f32.mrf.mxu0 }
 0x10c   :  { %v814_v35 = vadd.f32 %v813_v31, %v738_v32 }
 0x10d   :  { %v1110_v33 = vpop.f32.mrf.mxu0 }
 0x10f   :  { %v888_v34 = vpop.f32.mrf.mxu1 }
 0x110   :  { %v889_v37 = vadd.f32 %v888_v34, %v814_v35 }
 0x111   :  { %v1117_v36 = vpop.f32.mrf.mxu1 }
 0x113   :  { %v965_v38 = vpop.f32.mrf.mxu0 }
 0x114   :  { %v966_v40 = vadd.f32 %v965_v38, %v889_v37 }
 0x115   :  { %v1124_v39 = vpop.f32.mrf.mxu0 }
 0x117   :  { %v1038_v41 = vpop.f32.mrf.mxu1 }
 0x118   :  { %v1039_v42 = vadd.f32 %v1038_v41, %v966_v40 }
 0x119   :  { %v1131_v43 = vpop.f32.mrf.mxu1 }
 0x11a   :  { %v1042_v44 = vmul.f32 %v1039_v42, %v1039_v42 }
 0x11c   :  { %v1044_v45 = vsel %vm1043_vm4, %v1042_v44, 0.0 }
 0x11d   :  { %1045 = vadd.xlane.f32.xlu0 %v1044_v45 }
 0x1a6   :  { %v1046_v53 = vpop.xlane.xlu0 %1045 }
 0x1a7   :  { %v1047_v54 = vrot.slane %v1046_v53, 4 }
 0x1a9   :  { %v1048_v55 = vadd.f32 %v1047_v54, %v1046_v53 }
 0x1ab   :  { %v1049_v56 = vrot.slane %v1048_v55, 2 }
 0x1ad   :  { %v1050_v57 = vadd.f32 %v1049_v56, %v1048_v55 }
 0x1af   :  { %v1051_v58 = vrot.slane %v1050_v57, 1 }
 0x1b1   :  { %v1052_v59 = vadd.f32 %v1051_v58, %v1050_v57 }
 0x1b3   :  { %1134 = vpush %v1052_v59 }
 0x1e4   :  { %s1135_s1 = spop %1134 }
 0x1e5   :  { %s1054_s21 = ssub.f32 %s1133_s0, %s1135_s1 }
 0x1e7   :  { %1056 = sst [smem:[#allocation7]] %s1054_s21 }
 0x1e8   :  { %1064 = dma.smem_to_hbm %s1204_s22, 16, %s1329_s2, [#allocation4]  }
 0x1e9   :  { %1196 = dma.done.wait [#allocation4], 16  }
 0x1ea   :  { %1197 = vsyncadd [#allocation4], 4294967280 }
 0x1eb   :  { %1068 = sfence }
 0x1ec   :  { %1069 = vsyncpa [#allocation3], 1 }
 0x1ed   :  { %1070 = vsyncpa [#allocation6], 1 }
 0x1ee   :  { %1071 = vsyncpa [#allocation4], 1 }

</bundles_post_ra>
